<compile_context>
chip_gen: v6e
topology: v6e:2x2x1
jax: 0.10.0
libtpu: 0.0.40
codegen_flags: <defaults>
</compile_context>

<pallas_src>
import jax
import jax.numpy as jnp
from jax import lax
from jax.experimental import pallas as pl
from jax.experimental.pallas import tpu as pltpu

LN_EPS = 1e-12  # config.layer_norm_eps


def _round_up(x, m):
    return (x + m - 1) // m * m


def make_kernel(eps, real_h, group):
    inv_h = 1.0 / float(real_h)

    def kernel(atgt_ref, ctgt_ref, ans_ref, copy_ref, ag_ref, dcg_ref,
               base_ref, delta_ref, out_ref):
        A = ans_ref.shape[0]
        Hp = ans_ref.shape[1]
        GC = copy_ref.shape[1]
        M = atgt_ref.shape[2]
        pad_corr = float(Hp - real_h) * inv_h   # 0.0 when hidden is unpadded

        a_tgt = atgt_ref[0, 0]                  # [M, 1] int32 (-1 for copy rows)
        c_tgt = ctgt_ref[0, 0]                  # [M, 1] int32 (-1 for ans rows)
        tab_dtype = ans_ref.dtype

        # Canonical [M,K]x[K,H] one-hot gathers on the MXU over the *raw*
        # tables (LN commutes with a row gather). One-hots are exact 0/1 in
        # the tables' dtype, so no per-step table cast is needed.
        oh_a = (lax.broadcasted_iota(jnp.int32, (M, A), 1) == a_tgt
                ).astype(tab_dtype)             # [M, A]
        oh_c = (lax.broadcasted_iota(jnp.int32, (M, GC), 1) == c_tgt
                ).astype(tab_dtype)             # [M, G*C]
        raw = (lax.dot_general(oh_a, ans_ref[...], (((1,), (0,)), ((), ())),
                               preferred_element_type=jnp.float32)
               + lax.dot_general(oh_c, copy_ref[0], (((1,), (0,)), ((), ())),
                                 preferred_element_type=jnp.float32))  # [M, Hp]

        # Per-token LayerNorm over the real hidden width (padded lanes are
        # zero; the variance is corrected for them).
        mu = jnp.sum(raw, axis=-1, keepdims=True) * inv_h
        xc = raw - mu
        var = jnp.sum(xc * xc, axis=-1, keepdims=True) * inv_h
        if pad_corr:
            var = var - pad_corr * (mu * mu)
        nrm = xc * lax.rsqrt(var + eps)

        # is-copy flag derived in-kernel (exact {0,1}); delta-FMA selects.
        ge = (c_tgt >= 0).astype(jnp.float32)            # [M, 1]
        gamma = ag_ref[...] + ge * dcg_ref[...]          # [M, Hp]
        add = (jnp.tile(base_ref[...], (group, 1))
               + ge * jnp.tile(delta_ref[...], (group, 1)))  # [M, Hp]

        # TODO(synk): emb_dropout treated as eval-mode identity (no RNG mask).
        out_ref[0, 0] = (nrm * gamma + add).astype(out_ref.dtype)

    return kernel


def _choose_tiling(B, S, max_rows=1024):
    """Pick (G, Sc): batch-group size and seq-chunk size per grid step.

    Prefers M = G*Sc that is a multiple of 256 (then 128, then 8) and as large
    as possible up to max_rows, while keeping >= 2 grid steps whenever B*S >= 2
    so both v7x TensorCores get work (v5e/v6e have 1 TC and are unaffected).
    TODO(synk): lower max_rows (e.g. 256) on v7x when A*Hp is large enough to
    pressure its 64 MiB VMEM.
    """
    def divisors(n):
        return [d for d in range(1, n + 1) if n % d == 0]

    best = None
    for G in divisors(B):
        for Sc in divisors(S):
            if Sc != S and Sc % 8 != 0:
                continue                    # sublane alignment of (Sc, Hp) blocks
            M = G * Sc
            if M > max_rows:
                continue
            steps = (B // G) * (S // Sc)
            if B * S >= 2 and steps < 2:
                continue
            align = 3 if M % 256 == 0 else (2 if M % 128 == 0 else
                                            (1 if M % 8 == 0 else 0))
            key = (align, M, G)
            if best is None or key > best[0]:
                best = (key, (G, Sc))
    if best is None:
        return 1, S
    return best[1]


def prev_pred_embeddings(ans_emb, copy_emb, prev_ids, params):
    B, C, H = copy_emb.shape
    A = ans_emb.shape[0]
    S = prev_ids.shape[1]

    G, Sc = _choose_tiling(B, S)
    NG, NS = B // G, S // Sc
    M = G * Sc                             # gather rows per grid step
    Hp = _round_up(H, 128)                 # lane-dense hidden width

    def pad_h(x):
        if Hp == H:
            return x
        pads = [(0, 0)] * (x.ndim - 1) + [(0, Hp - H)]
        return jnp.pad(x, pads)

    # Per-token row targets, precomputed with cheap integer XLA ops.
    ids = prev_ids.astype(jnp.int32).reshape(NG, G, NS, Sc).transpose(0, 2, 1, 3)
    w = jnp.arange(G, dtype=jnp.int32)[None, None, :, None]  # within-group batch
    is_copy = ids >= A
    a_tgt = jnp.where(is_copy, -1, ids).reshape(NG, NS, M, 1)
    c_tgt = jnp.where(is_copy, w * C + ids - A, -1).reshape(NG, NS, M, 1)

    # Hoisted batch-invariant work (plain XLA, only 2*S rows):
    # LN(pos + type_t) for t in {0, 1}, folded with the LN betas into one
    # additive base term + copy-delta.
    pos = params["pos_table"][:S]                           # [S, H]
    ttab = params["type_table"][:2]                         # [2, H]
    pt = pos[None, :, :] + ttab[:, None, :]                 # [2, S, H]
    mu = pt.mean(-1, keepdims=True)
    var = ((pt - mu) ** 2).mean(-1, keepdims=True)
    emb = ((pt - mu) / jnp.sqrt(var + LN_EPS)
           * params["emb_gamma"][0] + params["emb_beta"][0])
    emb0, emb1 = emb[0], emb[1]                             # [S, H] each
    base_add = params["ans_beta"][0] + emb0                 # [S, H]
    delta_add = (params["copy_beta"][0] - params["ans_beta"][0]) + (emb1 - emb0)
    ag = params["ans_gamma"]                                # [1, H]
    dcg = params["copy_gamma"] - params["ans_gamma"]        # [1, H]

    # Lane-dense (zero-padded) operands; copy candidates flattened per group.
    ans_p = pad_h(ans_emb)                                  # [A, Hp]
    copy_p = pad_h(copy_emb).reshape(NG, G * C, Hp)         # [NG, G*C, Hp]
    ag_p, dcg_p = pad_h(ag), pad_h(dcg)                     # [1, Hp]
    base_p, delta_p = pad_h(base_add), pad_h(delta_add)     # [S, Hp]

    # Rough per-step VMEM budget -> explicit scoped-VMEM limit (v7x phys 64MiB).
    blk_bytes = 4 * (2 * M * 128 + A * Hp + G * C * Hp + 2 * 8 * Hp
                     + 2 * max(Sc, 8) * Hp + M * Hp)
    tmp_bytes = 4 * (M * (A + G * C) + 4 * M * Hp)
    vmem_limit = int(min(max(2 * blk_bytes + tmp_bytes + (4 << 20), 32 << 20),
                         64 << 20))

    cost = pl.CostEstimate(
        flops=int(2 * B * S * (A + G * C) * Hp + 10 * B * S * Hp),
        transcendentals=int(B * S),
        bytes_accessed=int(4 * (A * Hp + B * C * Hp + 2 * S * Hp
                                + 2 * B * S * 128 + B * S * Hp)))

    kernel = make_kernel(LN_EPS, H, G)

    out = pl.pallas_call(
        kernel,
        out_shape=jax.ShapeDtypeStruct((NG, NS, M, Hp), jnp.float32),
        grid_spec=pltpu.PrefetchScalarGridSpec(
            num_scalar_prefetch=0,
            grid=(NG, NS),
            in_specs=[
                pl.BlockSpec((1, 1, M, 1), lambda g, s: (g, s, 0, 0)),   # ans row targets
                pl.BlockSpec((1, 1, M, 1), lambda g, s: (g, s, 0, 0)),   # copy row targets
                pl.BlockSpec((A, Hp), lambda g, s: (0, 0)),              # raw ans table
                pl.BlockSpec((1, G * C, Hp), lambda g, s: (g, 0, 0)),    # raw copy rows
                pl.BlockSpec((1, Hp), lambda g, s: (0, 0)),              # ans LN gamma
                pl.BlockSpec((1, Hp), lambda g, s: (0, 0)),              # copy-ans gamma delta
                pl.BlockSpec((Sc, Hp), lambda g, s: (s, 0)),             # ans_beta + LN(pos+t0)
                pl.BlockSpec((Sc, Hp), lambda g, s: (s, 0)),             # copy additive delta
            ],
            out_specs=pl.BlockSpec((1, 1, M, Hp), lambda g, s: (g, s, 0, 0)),
        ),
        compiler_params=pltpu.CompilerParams(
            dimension_semantics=("parallel", "parallel"),
            vmem_limit_bytes=vmem_limit),
        cost_estimate=cost,
    )(a_tgt, c_tgt, ans_p, copy_p, ag_p, dcg_p, base_p, delta_p)

    out = out.reshape(NG, NS, G, Sc, Hp)
    if NS > 1:
        out = out.transpose(0, 2, 1, 3, 4)
    out = out.reshape(B, S, Hp)
    if Hp != H:
        out = out[:, :, :H]
    return out


def reference(ans_emb, copy_emb, prev_ids, params):
    """Pure-JAX reference mirroring the PyTorch forward."""
    def ln(x, g, b):
        mu = x.mean(-1, keepdims=True)
        var = ((x - mu) ** 2).mean(-1, keepdims=True)
        return (x - mu) / jnp.sqrt(var + LN_EPS) * g + b

    A = ans_emb.shape[0]
    B, S = prev_ids.shape
    ans = ln(ans_emb, params["ans_gamma"][0], params["ans_beta"][0])
    cpy = ln(copy_emb, params["copy_gamma"][0], params["copy_beta"][0])
    cat = jnp.concatenate([jnp.broadcast_to(ans[None], (B,) + ans.shape), cpy],
                          axis=1)
    raw = cat[jnp.arange(B)[:, None], prev_ids]             # batch gather
    pos = params["pos_table"][:S][None]
    tt = (prev_ids >= A).astype(jnp.int32)
    type_e = params["type_table"][tt]
    emb = ln(pos + type_e, params["emb_gamma"][0], params["emb_beta"][0])
    return raw + emb


if __name__ == "__main__":
    # Small shapes consistent with the module.
    B, S, H = 2, 8, 32          # batch, decode seq length, hidden_size
    A, C = 8, 6                 # ans vocab size, copy candidates per batch
    MAX_DEC_LENGTH = 16         # args.max_output_size
    MAX_TYPE_NUM = 2            # args.type_vocab_size

    key = jax.random.PRNGKey(0)
    k1, k2, k3, k4, k5 = jax.random.split(key, 5)

    ans_emb = jax.random.normal(k1, (A, H), dtype=jnp.float32)
    copy_emb = jax.random.normal(k2, (B, C, H), dtype=jnp.float32)
    prev_ids = jax.random.randint(k3, (B, S), 0, A + C, dtype=jnp.int32)

    params = {
        # nn.Embedding default init ~ N(0, 1)
        "pos_table": jax.random.normal(k4, (MAX_DEC_LENGTH, H), dtype=jnp.float32),
        "type_table": jax.random.normal(k5, (MAX_TYPE_NUM, H), dtype=jnp.float32),
        # nn.LayerNorm defaults: weight = 1, bias = 0
        "ans_gamma": jnp.ones((1, H), jnp.float32),
        "ans_beta": jnp.zeros((1, H), jnp.float32),
        "copy_gamma": jnp.ones((1, H), jnp.float32),
        "copy_beta": jnp.zeros((1, H), jnp.float32),
        "emb_gamma": jnp.ones((1, H), jnp.float32),
        "emb_beta": jnp.zeros((1, H), jnp.float32),
    }

    out = prev_pred_embeddings(ans_emb, copy_emb, prev_ids, params)
    out = jax.block_until_ready(out)

    ref = reference(ans_emb, copy_emb, prev_ids, params)
    assert out.shape == (B, S, H)
    assert jnp.allclose(out, ref, atol=1e-5, rtol=1e-5), (
        f"max abs err {jnp.max(jnp.abs(out - ref))}")

    print("KERNEL_OK")
</pallas_src>

<mosaic_0001>
module attributes {stable_mosaic.version = 11 : i64} {
  func.func @kernel(%arg0: i32, %arg1: i32, %arg2: memref<1x1x8x1xi32, #tpu.memory_space<vmem>>, %arg3: memref<1x1x8x1xi32, #tpu.memory_space<vmem>>, %arg4: memref<8x128xf32, #tpu.memory_space<vmem>>, %arg5: memref<1x6x128xf32, #tpu.memory_space<vmem>>, %arg6: memref<1x128xf32, #tpu.memory_space<vmem>>, %arg7: memref<1x128xf32, #tpu.memory_space<vmem>>, %arg8: memref<8x128xf32, #tpu.memory_space<vmem>>, %arg9: memref<8x128xf32, #tpu.memory_space<vmem>>, %arg10: memref<1x1x8x128xf32, #tpu.memory_space<vmem>>) attributes {dimension_semantics = [#tpu.dimension_semantics<parallel>, #tpu.dimension_semantics<parallel>], iteration_bounds = array<i64: 2, 1>, scalar_prefetch = 0 : i64, scratch_operands = 0 : i64, tpu.core_type = #tpu.core_type<tc>, window_params = [{transform_indices = @transform_0, window_bounds = array<i64: 1, 1, 8, 1>}, {transform_indices = @transform_1, window_bounds = array<i64: 1, 1, 8, 1>}, {pipeline_mode = #tpu.pipeline_mode<synchronous>, transform_indices = @transform_2, window_bounds = array<i64: 8, 128>}, {transform_indices = @transform_3, window_bounds = array<i64: 1, 6, 128>}, {pipeline_mode = #tpu.pipeline_mode<synchronous>, transform_indices = @transform_4, window_bounds = array<i64: 1, 128>}, {pipeline_mode = #tpu.pipeline_mode<synchronous>, transform_indices = @transform_5, window_bounds = array<i64: 1, 128>}, {transform_indices = @transform_6, window_bounds = array<i64: 8, 128>}, {transform_indices = @transform_7, window_bounds = array<i64: 8, 128>}, {transform_indices = @transform_8, window_bounds = array<i64: 1, 1, 8, 128>}]} {
    %c0 = arith.constant 0 : index
    %c0_0 = arith.constant 0 : index
    %c0_1 = arith.constant 0 : index
    %c0_2 = arith.constant 0 : index
    %0 = vector.load %arg2[%c0, %c0_0, %c0_1, %c0_2] : memref<1x1x8x1xi32, #tpu.memory_space<vmem>>, vector<1x1x8x1xi32>
    %1 = vector.shape_cast %0 : vector<1x1x8x1xi32> to vector<8x1xi32>
    %c0_3 = arith.constant 0 : index
    %c0_4 = arith.constant 0 : index
    %c0_5 = arith.constant 0 : index
    %c0_6 = arith.constant 0 : index
    %2 = vector.load %arg3[%c0_3, %c0_4, %c0_5, %c0_6] : memref<1x1x8x1xi32, #tpu.memory_space<vmem>>, vector<1x1x8x1xi32>
    %3 = vector.shape_cast %2 : vector<1x1x8x1xi32> to vector<8x1xi32>
    %4 = tpu.iota {dimensions = array<i32: 1>} : vector<8x8xi32>
    %5 = vector.broadcast %1 : vector<8x1xi32> to vector<8x8xi32>
    %6 = arith.cmpi eq, %4, %5 : vector<8x8xi32>
    %7 = arith.extui %6 : vector<8x8xi1> to vector<8x8xi32>
    %8 = arith.sitofp %7 : vector<8x8xi32> to vector<8x8xf32>
    %9 = tpu.iota {dimensions = array<i32: 1>} : vector<8x6xi32>
    %10 = vector.broadcast %3 : vector<8x1xi32> to vector<8x6xi32>
    %11 = arith.cmpi eq, %9, %10 : vector<8x6xi32>
    %12 = arith.extui %11 : vector<8x6xi1> to vector<8x6xi32>
    %13 = arith.sitofp %12 : vector<8x6xi32> to vector<8x6xf32>
    %c0_7 = arith.constant 0 : index
    %c0_8 = arith.constant 0 : index
    %14 = vector.load %arg4[%c0_7, %c0_8] : memref<8x128xf32, #tpu.memory_space<vmem>>, vector<8x128xf32>
    %cst = arith.constant dense<0.000000e+00> : vector<8x128xf32>
    %15 = tpu.matmul %8, %14, %cst {dimension_numbers = #tpu.dot_dimension_numbers<[1], [0], [0], [1], [0, 0, 1, 1], [], []>} : vector<8x8xf32>, vector<8x128xf32>, vector<8x128xf32> -> vector<8x128xf32>
    %c0_9 = arith.constant 0 : index
    %c0_10 = arith.constant 0 : index
    %c0_11 = arith.constant 0 : index
    %16 = vector.load %arg5[%c0_9, %c0_10, %c0_11] : memref<1x6x128xf32, #tpu.memory_space<vmem>>, vector<1x6x128xf32>
    %17 = vector.shape_cast %16 : vector<1x6x128xf32> to vector<6x128xf32>
    %cst_12 = arith.constant dense<0.000000e+00> : vector<8x128xf32>
    %18 = tpu.matmul %13, %17, %cst_12 {dimension_numbers = #tpu.dot_dimension_numbers<[1], [0], [0], [1], [0, 0, 1, 1], [], []>} : vector<8x6xf32>, vector<6x128xf32>, vector<8x128xf32> -> vector<8x128xf32>
    %19 = arith.addf %15, %18 : vector<8x128xf32>
    %cst_13 = arith.constant dense<0.000000e+00> : vector<8xf32>
    %20 = vector.multi_reduction <add>, %19, %cst_13 [1] : vector<8x128xf32> to vector<8xf32>
    %21 = vector.shape_cast %20 : vector<8xf32> to vector<8x1xf32>
    %cst_14 = arith.constant 3.125000e-02 : f32
    %22 = vector.broadcast %cst_14 : f32 to vector<8x1xf32>
    %23 = arith.mulf %21, %22 : vector<8x1xf32>
    %24 = vector.broadcast %23 : vector<8x1xf32> to vector<8x128xf32>
    %25 = arith.subf %19, %24 : vector<8x128xf32>
    %26 = arith.mulf %25, %25 : vector<8x128xf32>
    %cst_15 = arith.constant dense<0.000000e+00> : vector<8xf32>
    %27 = vector.multi_reduction <add>, %26, %cst_15 [1] : vector<8x128xf32> to vector<8xf32>
    %28 = vector.shape_cast %27 : vector<8xf32> to vector<8x1xf32>
    %cst_16 = arith.constant 3.125000e-02 : f32
    %29 = vector.broadcast %cst_16 : f32 to vector<8x1xf32>
    %30 = arith.mulf %28, %29 : vector<8x1xf32>
    %31 = arith.mulf %23, %23 : vector<8x1xf32>
    %cst_17 = arith.constant 3.000000e+00 : f32
    %32 = vector.broadcast %cst_17 : f32 to vector<8x1xf32>
    %33 = arith.mulf %32, %31 : vector<8x1xf32>
    %34 = arith.subf %30, %33 : vector<8x1xf32>
    %cst_18 = arith.constant 9.99999996E-13 : f32
    %35 = vector.broadcast %cst_18 : f32 to vector<8x1xf32>
    %36 = arith.addf %34, %35 : vector<8x1xf32>
    %37 = math.rsqrt %36 : vector<8x1xf32>
    %38 = vector.broadcast %37 : vector<8x1xf32> to vector<8x128xf32>
    %39 = arith.mulf %25, %38 : vector<8x128xf32>
    %c0_i32 = arith.constant 0 : i32
    %40 = vector.broadcast %c0_i32 : i32 to vector<8x1xi32>
    %41 = arith.cmpi sge, %3, %40 : vector<8x1xi32>
    %42 = arith.extui %41 : vector<8x1xi1> to vector<8x1xi32>
    %43 = arith.sitofp %42 : vector<8x1xi32> to vector<8x1xf32>
    %c0_19 = arith.constant 0 : index
    %c0_20 = arith.constant 0 : index
    %44 = vector.load %arg6[%c0_19, %c0_20] : memref<1x128xf32, #tpu.memory_space<vmem>>, vector<1x128xf32>
    %c0_21 = arith.constant 0 : index
    %c0_22 = arith.constant 0 : index
    %45 = vector.load %arg7[%c0_21, %c0_22] : memref<1x128xf32, #tpu.memory_space<vmem>>, vector<1x128xf32>
    %46 = vector.broadcast %43 : vector<8x1xf32> to vector<8x128xf32>
    %47 = vector.broadcast %45 : vector<1x128xf32> to vector<8x128xf32>
    %48 = arith.mulf %46, %47 : vector<8x128xf32>
    %49 = vector.broadcast %44 : vector<1x128xf32> to vector<8x128xf32>
    %50 = arith.addf %49, %48 : vector<8x128xf32>
    %c0_23 = arith.constant 0 : index
    %c0_24 = arith.constant 0 : index
    %51 = vector.load %arg8[%c0_23, %c0_24] : memref<8x128xf32, #tpu.memory_space<vmem>>, vector<8x128xf32>
    %c0_25 = arith.constant 0 : index
    %c0_26 = arith.constant 0 : index
    %52 = vector.load %arg9[%c0_25, %c0_26] : memref<8x128xf32, #tpu.memory_space<vmem>>, vector<8x128xf32>
    %53 = vector.broadcast %43 : vector<8x1xf32> to vector<8x128xf32>
    %54 = arith.mulf %53, %52 : vector<8x128xf32>
    %55 = arith.addf %51, %54 : vector<8x128xf32>
    %56 = arith.mulf %39, %50 : vector<8x128xf32>
    %57 = arith.addf %56, %55 : vector<8x128xf32>
    %c0_27 = arith.constant 0 : index
    %c0_28 = arith.constant 0 : index
    %c0_29 = arith.constant 0 : index
    %c0_30 = arith.constant 0 : index
    %58 = vector.load %arg10[%c0_27, %c0_28, %c0_29, %c0_30] : memref<1x1x8x128xf32, #tpu.memory_space<vmem>>, vector<1x1x8x128xf32>
    %59 = vector.shape_cast %58 : vector<1x1x8x128xf32> to vector<8x128xf32>
    %60 = vector.shape_cast %57 : vector<8x128xf32> to vector<1x1x8x128xf32>
    tpu.vector_store %arg10[%c0_27, %c0_28, %c0_29, %c0_30], %60 {strides = array<i32>} : memref<1x1x8x128xf32, #tpu.memory_space<vmem>>, vector<1x1x8x128xf32>,
    return
  }
  func.func @transform_0(%arg0: i32, %arg1: i32) -> (i32, i32, i32, i32) {
    %c0_i32 = arith.constant 0 : i32
    %c0_i32_0 = arith.constant 0 : i32
    %c0_i32_1 = arith.constant 0 : i32
    return %arg0, %arg1, %c0_i32, %c0_i32_0 : i32, i32, i32, i32
  }
  func.func @transform_1(%arg0: i32, %arg1: i32) -> (i32, i32, i32, i32) {
    %c0_i32 = arith.constant 0 : i32
    %c0_i32_0 = arith.constant 0 : i32
    %c0_i32_1 = arith.constant 0 : i32
    return %arg0, %arg1, %c0_i32, %c0_i32_0 : i32, i32, i32, i32
  }
  func.func @transform_2(%arg0: i32, %arg1: i32) -> (i32, i32) {
    %c0_i32 = arith.constant 0 : i32
    %c0_i32_0 = arith.constant 0 : i32
    %c0_i32_1 = arith.constant 0 : i32
    return %c0_i32, %c0_i32_0 : i32, i32
  }
  func.func @transform_3(%arg0: i32, %arg1: i32) -> (i32, i32, i32) {
    %c0_i32 = arith.constant 0 : i32
    %c0_i32_0 = arith.constant 0 : i32
    %c0_i32_1 = arith.constant 0 : i32
    return %arg0, %c0_i32, %c0_i32_0 : i32, i32, i32
  }
  func.func @transform_4(%arg0: i32, %arg1: i32) -> (i32, i32) {
    %c0_i32 = arith.constant 0 : i32
    %c0_i32_0 = arith.constant 0 : i32
    %c0_i32_1 = arith.constant 0 : i32
    return %c0_i32, %c0_i32_0 : i32, i32
  }
  func.func @transform_5(%arg0: i32, %arg1: i32) -> (i32, i32) {
    %c0_i32 = arith.constant 0 : i32
    %c0_i32_0 = arith.constant 0 : i32
    %c0_i32_1 = arith.constant 0 : i32
    return %c0_i32, %c0_i32_0 : i32, i32
  }
  func.func @transform_6(%arg0: i32, %arg1: i32) -> (i32, i32) {
    %c0_i32 = arith.constant 0 : i32
    %c0_i32_0 = arith.constant 0 : i32
    return %arg1, %c0_i32 : i32, i32
  }
  func.func @transform_7(%arg0: i32, %arg1: i32) -> (i32, i32) {
    %c0_i32 = arith.constant 0 : i32
    %c0_i32_0 = arith.constant 0 : i32
    return %arg1, %c0_i32 : i32, i32
  }
  func.func @transform_8(%arg0: i32, %arg1: i32) -> (i32, i32, i32, i32) {
    %c0_i32 = arith.constant 0 : i32
    %c0_i32_0 = arith.constant 0 : i32
    %c0_i32_1 = arith.constant 0 : i32
    return %arg0, %arg1, %c0_i32, %c0_i32_0 : i32, i32, i32, i32
  }
}

</mosaic_0001>

<bundles_post_ra>
// kernel: tpu_custom_call.1
= control target key start
LH: loop header
LB: loop body
LE: loop exit
PB: predicated region body
PF: predicated region fallthrough
CT: control target
= control target key end

     0   :  { %13 = vsyncpa [#allocation3], 0  ;;  %s1108_s0 = inlined_call_operand.vmem [shape: s32[2,1,8,1], index: 0, kind: input, shape index: {}]   ;;  %s1109_s1 = inlined_call_operand.vmem [shape: s32[2,1,8,1], index: 1, kind: input, shape index: {}]   ;;  %s1110_s2 = inlined_call_operand.vmem [shape: f32[8,128], index: 2, kind: input, shape index: {}]   ;;  %s1111_s3 = inlined_call_operand.vmem [shape: f32[2,6,128], index: 3, kind: input, shape index: {}]   ;;  %s1112_s4 = inlined_call_operand.vmem [shape: f32[1,128], index: 4, kind: input, shape index: {}]   ;;  %s1113_s5 = inlined_call_operand.vmem [shape: f32[1,128], index: 5, kind: input, shape index: {}]   ;;  %s1114_s6 = inlined_call_operand.vmem [shape: f32[8,128], index: 6, kind: input, shape index: {}]   ;;  %s1115_s7 = inlined_call_operand.vmem [shape: f32[8,128], index: 7, kind: input, shape index: {}]   ;;  %s1116_s8 = inlined_call_operand.hbm [shape: f32[2,1,8,128], index: 8, kind: output, shape index: {}]  }
   0x1   :  { %15 = vsyncpa [#allocation3 + $0x1], 0  ;;  %s988_s27 = smov 0   ;;  %s990_s28 = smov 0  }
   0x2   :  { %s992_s29 = smov 0   ;;  %s994_s30 = smov 0  }
   0x3   :  { %s996_s9 = smov 0   ;;  %s998_s10 = smov 0  }
   0x4 LB: > { %s763_s11 = sadd.s32 4294967295, %s937_s10   ;;  %s764_s12 = sadd.s32 4294967294, %s937_s10   ;;  %s937_s10 = sphi %s998_s10, %s21_s10   ;;  %s933_s9 = sphi %s996_s9, %s1126_s9   ;;  %s929_s30 = sphi %s994_s30, %s1125_s30   ;;  %s925_s29 = sphi %s992_s29, %s1124_s29   ;;  %s921_s28 = sphi %s990_s28, %s1123_s28   ;;  %s917_s27 = sphi %s988_s27, %s1122_s27  }
   0x5   : > { %s33_s13 = sadd.s32 1, %s933_s9  ;;  %s239_s14 = sadd.s32 1, %s925_s29 }
   0x6   : > { %p35_p0 = scmp.ge.s32.totalorder %s33_s13, 2  ;;  %p249_p1 = scmp.ne.s32.totalorder %s925_s29, %s921_s28 }
   0x7   : > { %p250_p2 = scmp.eq.s32.totalorder %s763_s11, 1  ;;  %p255_p3 = scmp.ne.s32.totalorder %s921_s28, %s917_s27 }
   0x8   : > { %s1128_s13 = smov (%p35_p0, %s33_s13), 0  ;;  %p256_p5 = scmp.eq.s32.totalorder %s764_s12, 1 }
   0x9   : > { %1118 = sst [smem:[#allocation5_spill]] %s1128_s13  ;;  %p1028_p4 = por %p250_p2, %p249_p1 }
   0xa   : > { %s234_s16 = ssub.s32 %s933_s9, %s1128_s13  ;;  %p769_p6 = scmp.ge.s32.totalorder %s937_s10, 1 }
   0xb   : > { %p237_p7 = scmp.eq.s32.totalorder %s234_s16, 0  ;;  %p1035_p8 = por %p256_p5, %p255_p3 }
   0xc   : > { %p324_p9 = scmp.lt.s32.totalorder %s937_s10, 3 }
   0xd   : > { %s1041_s18 = scalar_select %p237_p7, %s925_s29, %s239_s14  }
   0xe   : > { %p325_p10 = pnand %p769_p6, %p324_p9 }
   0xf   : > { %p379_p11 = scmp.lt.s32.totalorder (!%p325_p10), %s929_s30, 1 }
  0x10   : > { %328 = sbr.rel (%p325_p10) target bundleno = 672 (0x2a0), region = 52 }
  0x15   : > { %v939_v0 = vmov 0   ;;  %v940_v1 = vmov 0.0   ;;  %s380_s19 = scalar_select %p379_p11, %s929_s30, 1  ;;  %v421_v2 = vld [vmem:[%s1110_s2] sm:$0xff]  ;;  %vm941_vm0 = vmmov 0   ;;  %vm427_vm1 = vcmask 1045504  }
  0x16   : > { %858 = vset.pattern.permute.xlu0 %v939_v0  ;;  %795 = vmatprep.subr.mxu1 %v940_v1  ;;  %v407_v7 = vlaneseq  ;;  %vm501_vm3 = vcmask 64512   ;;  %vm423_vm5 = vcmask 48128   ;;  %v780_v28 = vld [vmem:[%s1113_s5] ss:$0 sm:$0xff] }
  0x17   : > { %790 = vmatprep.subr.mxu0 %v940_v1  ;;  %s771_s22 = sshll.u32 %s380_s19, 3  ;;  %796 = vmatpush3.msra.mxu1 %v421_v2  ;;  %v614_v30 = vld [vmem:[%s1115_s7] sm:$0xff] }
  0x18   : > { %797 = vmatprep.mubr.msk.f32.mxu1 %vm941_vm0, %v940_v1  ;;  %s385_s25 = scalar_lea.vmem %s1108_s0, %s771_s22  ;;  %s392_s12 = scalar_lea.vmem %s1109_s1, %s771_s22  ;;  %792 = vmatprep.mubr.msk.f32.mxu0 %vm941_vm0, %v940_v1  ;;  %v408_v8 = vand.u32 127, %v407_v7  ;;  %v781_v32 = vld [vmem:[%s1112_s4] ss:$0 sm:$0xff] }
  0x19   : > { %v405_v3 = vld [vmem:[%s385_s25] sm:$0xff]  ;;  %s396_s13 = scalar_lea.vmem %s1111_s3, %s771_s22  ;;  %s942_s25 = smov [#allocation2]  }
  0x1a   : > { %410 = vperm.xlu0 %858, %v405_v3   ;;  %v422_v4 = vld [vmem:[%s396_s13] sm:$0x3f]  ;;  %s376_s13 = sand.u32 1, %s921_s28   ;;  %s865_s26 = sshll.u32 %s942_s25, 4  ;;  %s866_s26 = int_to_ptr.vmem [resolvable:$false] %s865_s26 }
  0x1b   : > { %v406_v5 = vld [vmem:[%s392_s12] sm:$0xff]  ;;  %791 = vmatpush3.msk.msra.mxu0 %vm427_vm1, %v422_v4  ;;  %s770_s23 = sshll.u32 %s376_s13, 3  ;;  %s783_s12 = sshll.u32 %s929_s30, 7 }
  0x1c   : > { %vm589_vm2 = vcmp.ge.s32.totalorder %v406_v5, 0  ;;  %v613_v35 = vld [vmem:[%s1114_s6] sm:$0xff]  ;;  %s378_s14 = scalar_lea.vmem [#allocation2], %s770_s23  ;;  %s633_s21 = scalar_lea.hbm %s1116_s8, %s783_s12 }
  0x1d   : > { %v779_v6 = vsel %vm589_vm2, 1.0, %v940_v1  ;;  %s635_s16 = sshll.u32 %s378_s14, 4  ;;  %s621_s22 = scalar_lea.sflag [#allocation3], %s376_s13  ;;  %s636_s16 = int_to_ptr.vmem [resolvable:$true] %s635_s16 }
  0x1e   : > { %416 = vperm.xlu0 %858, %v406_v5   ;;  %s861_s24 = scalar_lea.vmem %s636_s16, 128  ;;  %s867_s30 = scalar_lea.vmem %s866_s26, 256 }
  0x1f   : > { %p862_p12 = scmp.ne.s32.totalorder %s636_s16, %s861_s24  ;;  %p868_p1 = scmp.lt.s32.totalorder %s636_s16, %s866_s26 }
  0x20   : > { %p869_p2 = scmp.lt.s32.totalorder %s867_s30, %s861_s24 }
  0x21   : > { %p863_p13 = pnand %p862_p12, %p1028_p4 }
  0x22   : > { %596 = vperm.xlu0 %858, %v779_v6   ;;  %p870_p3 = por %p869_p2, %p868_p1 }
  0x23   : > { %p864_p0 = pneg %p863_p13 }
  0x25   : > { %p871_p5 = pnand %p870_p3, %p864_p0 }
  0x95   : > { %v411_v9 = vpop.permute.xlu0 %410 }
  0x96   : > { %vm412_vm4 = vcmp.eq.s32.totalorder %v408_v8, %v411_v9 }
  0x97   : > { %v774_v10 = vsel %vm412_vm4, 1.0, %v940_v1 }
  0x98   : > { %798 = vmatmul.mubr.msk.f32.vlgmr.msra.gmra.mxu1 %vm501_vm3, %v774_v10 }
  0x99   : > { %v417_v11 = vpop.permute.xlu0 %416 }
  0x9a   : > { %vm418_vm6 = vcmp.eq.s32.totalorder %v408_v8, %v417_v11 }
  0x9b   : > { %v775_v12 = vsel %vm418_vm6, 1.0, %v940_v1 }
  0x9c   : > { %793 = vmatmul.mubr.msk.f32.vlgmr.msra.gmra.mxu0 %vm423_vm5, %v775_v12 }
  0x9d   : > { %v597_v29 = vpop.permute.xlu0 %596 }
  0x9e   : > { %v605_v31 = vmul.f32 %v780_v28, %v597_v29  ;;  %v615_v33 = vmul.f32 %v614_v30, %v597_v29 }
  0xa0   : > { %v612_v36 = vadd.f32 %v781_v32, %v605_v31  ;;  %v616_v38 = vadd.f32 %v615_v33, %v613_v35 }
 0x158   : > { %v571_v13 = vpop.f32.mrf.mxu1 }
 0x15a   : > { %v799_v14 = vpop.f32.mrf.mxu1 }
 0x15c   : > { %v497_v15 = vpop.f32.mrf.mxu0 }
 0x15d   : > { %v572_v16 = vadd.f32 %v571_v13, %v497_v15 }
 0x15e   : > { %v794_v17 = vpop.f32.mrf.mxu0 }
 0x15f   : > { %575 = vadd.xlane.f32.xlu1 %v572_v16 }
 0x1e8   : > { %v576_v18 = vpop.xlane.xlu1 %575 }
 0x1e9   : > { %v577_v19 = vmul.f32 0.03125, %v576_v18 }
 0x1eb   : > { %v578_v20 = vsub.f32 %v572_v16, %v577_v19  ;;  %v583_v22 = vmul.f32 %v577_v19, %v577_v19 }
 0x1ed   : > { %v579_v21 = vmul.f32 %v578_v20, %v578_v20  ;;  %v584_v24 = vmul.f32 3.0, %v583_v22 }
 0x1ef   : > { %580 = vadd.xlane.f32.xlu1 %v579_v21 }
 0x278   : > { %v581_v23 = vpop.xlane.xlu1 %580 }
 0x279   : > { %v582_v25 = vmul.f32 0.03125, %v581_v23 }
 0x27b   : > { %v585_v26 = vsub.f32 %v582_v25, %v584_v24 }
 0x27d   : > { %v586_v27 = vadd.f32 1e-12, %v585_v26 }
 0x27f   : > { %859 = vrsqrt.f32 %v586_v27 }
 0x28c   : > { %v860_v34 = vpop.eup %859 }
 0x28d   : > { %v588_v37 = vmul.f32 %v860_v34, %v578_v20 }
 0x28f   : > { %v617_v39 = vmul.f32 %v612_v36, %v588_v37 }
 0x291   : > { %v618_v40 = vadd.f32 %v617_v39, %v616_v38 }
 0x293   : > { %619 = vst [vmem:[%s378_s14] sm:$0xff] %v618_v40 }
 0x294   : > { %874 = shalt.err (!%p871_p5)
}
 0x295   : > { %s875_s23 = scalar_lea.hbm %s633_s21, 128  ;;  %s879_s12 = scalar_lea.hbm %s1116_s8, 256 }
 0x296   : > { %p876_p6 = scmp.ne.s32.totalorder %s633_s21, %s875_s23  ;;  %p880_p10 = scmp.lt.s32.totalorder %s633_s21, %s1116_s8 }
 0x297   : > { %p881_p11 = scmp.lt.s32.totalorder %s879_s12, %s875_s23 }
 0x298   : > { %p877_p7 = pnand %p876_p6, %p1028_p4 }
 0x299   : > { %p882_p12 = por %p881_p11, %p880_p10 }
 0x29a   : > { %p878_p9 = pneg %p877_p7 }
 0x29c   : > { %p883_p13 = pnand %p882_p12, %p878_p9 }
 0x29e   : > { %886 = shalt.err (!%p883_p13)
}
 0x29f   : > { %800 = dma.vmem_to_hbm [thread:$0]  (%p1028_p4), %s636_s16, 128, %s633_s21, %s621_s22  }
 0x2a0 PF: > { %p806_p0 = scmp.ge.s32.totalorder %s937_s10, 2  ;;  %s647_s20 = sand.u32 1, %s917_s27  }
 0x2a1   : > { %s648_s24 = scalar_lea.sflag [#allocation3], %s647_s20 }
 0x2a2   : > { %p803_p1 = pnand %p806_p0, %p1035_p8 }
 0x2a4   : > { %p804_p2 = pneg %p803_p1 }
 0x2a6   : > { %912 = dma.done.wait (%p804_p2), %s648_s24, 128  }
 0x2a7   : > { %914 = vsyncadd (%p804_p2), %s648_s24, 4294967168  ;;  %s21_s10 = sadd.s32 1, %s937_s10   ;;  %s1121_s15 = sld [smem:[#allocation5_spill]] }
 0x2a8   : > { %p18_p3 = scmp.ge.s32.totalorder %s21_s10, 4   ;;  %s1122_s27 = smov %s921_s28 }
 0x2a9   : > { %s1123_s28 = smov %s925_s29  ;;  %s1124_s29 = smov %s1041_s18 }
 0x2aa   : > { %s1125_s30 = smov %s933_s9  ;;  %20 = sbr.rel (!%p18_p3) target bundleno = 4 (0x4), region = 99 }
 0x2ad   : > { %s1126_s9 = smov %s1121_s15 }
 0x2af   :  { %653 = vsyncpa [#allocation3], 1 }
 0x2b0   :  { %655 = vsyncpa [#allocation3 + $0x1], 1 }

</bundles_post_ra>
